<compile_context>
chip_gen: v7x
topology: tpu7x:2x2x1
jax: 0.10.0
libtpu: 0.0.40
codegen_flags: <defaults>
</compile_context>

<pallas_src>
import jax
import jax.numpy as jnp
from jax.experimental import pallas as pl
from jax.experimental.pallas import tpu as pltpu


def _disc_kernel(cw_ref, cb_ref, b4_ref,                  # SMEM scalars
                 x_ref, w1t_ref, b1_ref, w3t_ref, b3_ref, w4_ref,
                 o_ref):
    # x_ref: (TB, 2*L) bf16 -- batch on sublanes, [ch0 | ch1] along lanes.
    L = w1t_ref.shape[0]
    xf = x_ref[...].astype(jnp.float32)                   # upcast once (VPU)
    # Conv1d(2, 1, kernel=1): per-position channel mix, f32, then ReLU.
    h = cw_ref[0] * xf[:, :L] + cw_ref[1] * xf[:, L:] + cb_ref[0]   # (TB, L)
    h = jnp.maximum(h, 0.0)
    # fc1: (TB, L) @ (L, 128) -- bf16 MXU operands, f32 accumulation.
    h = jnp.dot(h.astype(w1t_ref.dtype), w1t_ref[...],
                preferred_element_type=jnp.float32) + b1_ref[...]   # (TB, 128)
    h = jnp.maximum(h, 0.0)
    # fc3: (TB, 128) @ (128, 128)
    h = jnp.dot(h.astype(w3t_ref.dtype), w3t_ref[...],
                preferred_element_type=jnp.float32) + b3_ref[...]   # (TB, 128)
    h = jnp.maximum(h, 0.0)
    # fc4 (output dim 1): f32 VPU multiply + lane reduce -> (TB, 1).
    o_ref[...] = jnp.sum(h * w4_ref[...], axis=1, keepdims=True) + b4_ref[0]


def _round_up(n, m):
    return ((n + m - 1) // m) * m


def _pick_tiles(batch, tb_max=2048):
    """Pad batch to a multiple of 256 (full MXU-N / lane packing on v6e/v7x),
    pick the largest 256-multiple tile that divides it (no wasted padded
    tile), and keep >= 2 grid steps when the batch allows it (v7x: 2 TCs)."""
    bp = _round_up(batch, 256)
    divs = [d for d in range(256, bp + 1, 256) if bp % d == 0]
    cands = [d for d in divs if d <= tb_max] or [divs[0]]
    if bp >= 512:
        two_step = [d for d in cands if bp // d >= 2]
        if two_step:
            cands = two_step
    return bp, max(cands)


def init_params(key, zsize, weight_dtype=jnp.bfloat16):
    ks = jax.random.split(key, 8)

    def u(k, shape, fan_in):
        bound = 1.0 / jnp.sqrt(float(fan_in))
        return jax.random.uniform(k, shape, jnp.float32, -bound, bound)

    # nn.Conv1d(2, 1, 1): weight (1, 2, 1), bias (1,)
    conv_w = u(ks[0], (1, 2, 1), 2)
    conv_b = u(ks[1], (1,), 2)
    # nn.Linear weights are (out, in); store them pre-transposed as (in, out)
    # so the kernel's batch-on-sublanes matmuls are h @ W^T directly.
    w1 = u(ks[2], (128, zsize), zsize); b1 = u(ks[3], (128,), zsize)
    w3 = u(ks[4], (128, 128), 128);     b3 = u(ks[5], (128,), 128)
    w4 = u(ks[6], (1, 128), 128);       b4 = u(ks[7], (1,), 128)
    return {
        "cw": conv_w.reshape(2),                 # two taps of the k=1 conv (SMEM)
        "cb": conv_b.reshape(1),                 # conv bias (SMEM)
        "w1t": w1.T.astype(weight_dtype),        # (zsize, 128) bf16, resident
        "b1": b1.reshape(1, 128),                # f32 row, broadcasts over sublanes
        "w3t": w3.T.astype(weight_dtype),        # (128, 128) bf16, resident
        "b3": b3.reshape(1, 128),
        "w4": w4.reshape(1, 128),                # f32 row (fc4 VPU reduce)
        "b4": b4,                                # (1,) SMEM scalar
    }


def discriminator_forward(x, params, *, tb_max=2048):
    """x: (B, 2, zsize) float32 (PyTorch NCL).  Returns (B, 1, 1) float32."""
    B, C, L = x.shape
    assert C == 2
    Bp, tb = _pick_tiles(B, tb_max)

    # Minor-dims merge (no transpose, no batch relayout) + bf16 cast fused
    # with it; pad batch to the tile multiple (padded rows are sliced off).
    xr = x.reshape(B, 2 * L).astype(jnp.bfloat16)
    if Bp != B:
        xr = jnp.pad(xr, ((0, Bp - B), (0, 0)))

    smem = pl.BlockSpec(memory_space=pltpu.MemorySpace.SMEM)
    out = pl.pallas_call(
        _disc_kernel,
        out_shape=jax.ShapeDtypeStruct((Bp, 1), jnp.float32),
        grid=(Bp // tb,),
        in_specs=[
            smem, smem, smem,                                  # cw, cb, b4
            pl.BlockSpec((tb, 2 * L), lambda i: (i, 0)),       # x tile (streamed)
            pl.BlockSpec((L, 128), lambda i: (0, 0)),          # w1^T (resident)
            pl.BlockSpec((1, 128), lambda i: (0, 0)),          # b1
            pl.BlockSpec((128, 128), lambda i: (0, 0)),        # w3^T
            pl.BlockSpec((1, 128), lambda i: (0, 0)),          # b3
            pl.BlockSpec((1, 128), lambda i: (0, 0)),          # w4
        ],
        out_specs=pl.BlockSpec((tb, 1), lambda i: (i, 0)),
        compiler_params=pltpu.CompilerParams(
            dimension_semantics=("parallel",),
            vmem_limit_bytes=32 * 1024 * 1024,
        ),
    )(params["cw"], params["cb"], params["b4"],
      xr, params["w1t"], params["b1"], params["w3t"], params["b3"], params["w4"])
    return out[:B].reshape(B, 1, 1)


def discriminator_reference(x, params):
    """Pure-JAX reference doing the same math (bf16 x / MXU operands, f32 accum)."""
    B, _, L = x.shape
    xb = x.astype(jnp.bfloat16).astype(jnp.float32)
    h = params["cw"][0] * xb[:, 0, :] + params["cw"][1] * xb[:, 1, :] + params["cb"][0]
    h = jnp.maximum(h, 0.0)                                            # (B, L)
    h = jnp.dot(h.astype(params["w1t"].dtype), params["w1t"],
                preferred_element_type=jnp.float32) + params["b1"]
    h = jnp.maximum(h, 0.0)                                            # (B, 128)
    h = jnp.dot(h.astype(params["w3t"].dtype), params["w3t"],
                preferred_element_type=jnp.float32) + params["b3"]
    h = jnp.maximum(h, 0.0)                                            # (B, 128)
    o = jnp.sum(h * params["w4"], axis=1, keepdims=True) + params["b4"][0]
    return o.reshape(B, 1, 1)


if __name__ == "__main__":
    zsize = 32
    B = 8
    key = jax.random.PRNGKey(0)
    kx, kp = jax.random.split(key)
    x = jax.random.normal(kx, (B, 2, zsize), jnp.float32)   # (N, C=2, L=zsize)
    params = init_params(kp, zsize)

    fwd = jax.jit(discriminator_forward)
    out = jax.block_until_ready(fwd(x, params))
    ref = jax.block_until_ready(discriminator_reference(x, params))

    assert out.shape == (B, 1, 1), out.shape
    # bf16 x / bf16 MXU operands with f32 accumulation: small slack vs the XLA
    # reference doing the same math (different accumulation order).
    err = float(jnp.max(jnp.abs(out - ref)))
    assert err < 2e-3, err

    print("KERNEL_OK")
</pallas_src>

<mosaic_0001>
module attributes {stable_mosaic.version = 11 : i64} {
  func.func @_disc_kernel(%arg0: i32, %arg1: memref<2xf32, #tpu.memory_space<smem>>, %arg2: memref<1xf32, #tpu.memory_space<smem>>, %arg3: memref<1xf32, #tpu.memory_space<smem>>, %arg4: memref<256x64xbf16, #tpu.memory_space<vmem>>, %arg5: memref<32x128xbf16, #tpu.memory_space<vmem>>, %arg6: memref<1x128xf32, #tpu.memory_space<vmem>>, %arg7: memref<128x128xbf16, #tpu.memory_space<vmem>>, %arg8: memref<1x128xf32, #tpu.memory_space<vmem>>, %arg9: memref<1x128xf32, #tpu.memory_space<vmem>>, %arg10: memref<256x1xf32, #tpu.memory_space<vmem>>) attributes {dimension_semantics = [#tpu.dimension_semantics<parallel>], iteration_bounds = array<i64: 1>, scalar_prefetch = 0 : i64, scratch_operands = 0 : i64, tpu.core_type = #tpu.core_type<tc>, window_params = [{transform_indices = @transform_0, window_bounds = array<i64: 2>}, {transform_indices = @transform_1, window_bounds = array<i64: 1>}, {transform_indices = @transform_2, window_bounds = array<i64: 1>}, {transform_indices = @transform_3, window_bounds = array<i64: 256, 64>}, {pipeline_mode = #tpu.pipeline_mode<synchronous>, transform_indices = @transform_4, window_bounds = array<i64: 32, 128>}, {pipeline_mode = #tpu.pipeline_mode<synchronous>, transform_indices = @transform_5, window_bounds = array<i64: 1, 128>}, {pipeline_mode = #tpu.pipeline_mode<synchronous>, transform_indices = @transform_6, window_bounds = array<i64: 128, 128>}, {pipeline_mode = #tpu.pipeline_mode<synchronous>, transform_indices = @transform_7, window_bounds = array<i64: 1, 128>}, {pipeline_mode = #tpu.pipeline_mode<synchronous>, transform_indices = @transform_8, window_bounds = array<i64: 1, 128>}, {transform_indices = @transform_9, window_bounds = array<i64: 256, 1>}]} {
    %c0 = arith.constant 0 : index
    %c0_0 = arith.constant 0 : index
    %0 = vector.load %arg4[%c0, %c0_0] : memref<256x64xbf16, #tpu.memory_space<vmem>>, vector<256x64xbf16>
    %1 = arith.extf %0 : vector<256x64xbf16> to vector<256x64xf32>
    %c0_1 = arith.constant 0 : index
    %2 = memref.load %arg1[%c0_1] : memref<2xf32, #tpu.memory_space<smem>>
    %3 = vector.extract_strided_slice %1 {offsets = [0, 0], sizes = [256, 32], strides = [1, 1]} : vector<256x64xf32> to vector<256x32xf32>
    %4 = vector.broadcast %2 : f32 to vector<256x32xf32>
    %5 = arith.mulf %4, %3 : vector<256x32xf32>
    %c1 = arith.constant 1 : index
    %6 = memref.load %arg1[%c1] : memref<2xf32, #tpu.memory_space<smem>>
    %7 = vector.extract_strided_slice %1 {offsets = [0, 32], sizes = [256, 32], strides = [1, 1]} : vector<256x64xf32> to vector<256x32xf32>
    %8 = vector.broadcast %6 : f32 to vector<256x32xf32>
    %9 = arith.mulf %8, %7 : vector<256x32xf32>
    %10 = arith.addf %5, %9 : vector<256x32xf32>
    %c0_2 = arith.constant 0 : index
    %11 = memref.load %arg2[%c0_2] : memref<1xf32, #tpu.memory_space<smem>>
    %12 = vector.broadcast %11 : f32 to vector<256x32xf32>
    %13 = arith.addf %10, %12 : vector<256x32xf32>
    %cst = arith.constant 0.000000e+00 : f32
    %14 = vector.broadcast %cst : f32 to vector<256x32xf32>
    %15 = arith.maximumf %13, %14 : vector<256x32xf32>
    %16 = arith.truncf %15 : vector<256x32xf32> to vector<256x32xbf16>
    %c0_3 = arith.constant 0 : index
    %c0_4 = arith.constant 0 : index
    %17 = vector.load %arg5[%c0_3, %c0_4] : memref<32x128xbf16, #tpu.memory_space<vmem>>, vector<32x128xbf16>
    %cst_5 = arith.constant dense<0.000000e+00> : vector<256x128xf32>
    %18 = tpu.matmul %16, %17, %cst_5 {dimension_numbers = #tpu.dot_dimension_numbers<[1], [0], [0], [1], [0, 0, 1, 1], [], []>} : vector<256x32xbf16>, vector<32x128xbf16>, vector<256x128xf32> -> vector<256x128xf32>
    %c0_6 = arith.constant 0 : index
    %c0_7 = arith.constant 0 : index
    %19 = vector.load %arg6[%c0_6, %c0_7] : memref<1x128xf32, #tpu.memory_space<vmem>>, vector<1x128xf32>
    %20 = vector.broadcast %19 : vector<1x128xf32> to vector<256x128xf32>
    %21 = arith.addf %18, %20 : vector<256x128xf32>
    %cst_8 = arith.constant 0.000000e+00 : f32
    %22 = vector.broadcast %cst_8 : f32 to vector<256x128xf32>
    %23 = arith.maximumf %21, %22 : vector<256x128xf32>
    %24 = arith.truncf %23 : vector<256x128xf32> to vector<256x128xbf16>
    %c0_9 = arith.constant 0 : index
    %c0_10 = arith.constant 0 : index
    %25 = vector.load %arg7[%c0_9, %c0_10] : memref<128x128xbf16, #tpu.memory_space<vmem>>, vector<128x128xbf16>
    %cst_11 = arith.constant dense<0.000000e+00> : vector<256x128xf32>
    %26 = tpu.matmul %24, %25, %cst_11 {dimension_numbers = #tpu.dot_dimension_numbers<[1], [0], [0], [1], [0, 0, 1, 1], [], []>} : vector<256x128xbf16>, vector<128x128xbf16>, vector<256x128xf32> -> vector<256x128xf32>
    %c0_12 = arith.constant 0 : index
    %c0_13 = arith.constant 0 : index
    %27 = vector.load %arg8[%c0_12, %c0_13] : memref<1x128xf32, #tpu.memory_space<vmem>>, vector<1x128xf32>
    %28 = vector.broadcast %27 : vector<1x128xf32> to vector<256x128xf32>
    %29 = arith.addf %26, %28 : vector<256x128xf32>
    %cst_14 = arith.constant 0.000000e+00 : f32
    %30 = vector.broadcast %cst_14 : f32 to vector<256x128xf32>
    %31 = arith.maximumf %29, %30 : vector<256x128xf32>
    %c0_15 = arith.constant 0 : index
    %c0_16 = arith.constant 0 : index
    %32 = vector.load %arg9[%c0_15, %c0_16] : memref<1x128xf32, #tpu.memory_space<vmem>>, vector<1x128xf32>
    %33 = vector.broadcast %32 : vector<1x128xf32> to vector<256x128xf32>
    %34 = arith.mulf %31, %33 : vector<256x128xf32>
    %cst_17 = arith.constant dense<0.000000e+00> : vector<256xf32>
    %35 = vector.multi_reduction <add>, %34, %cst_17 [1] : vector<256x128xf32> to vector<256xf32>
    %36 = vector.shape_cast %35 : vector<256xf32> to vector<256x1xf32>
    %c0_18 = arith.constant 0 : index
    %37 = memref.load %arg3[%c0_18] : memref<1xf32, #tpu.memory_space<smem>>
    %38 = vector.broadcast %37 : f32 to vector<256x1xf32>
    %39 = arith.addf %36, %38 : vector<256x1xf32>
    %c0_19 = arith.constant 0 : index
    %c0_20 = arith.constant 0 : index
    %40 = vector.load %arg10[%c0_19, %c0_20] : memref<256x1xf32, #tpu.memory_space<vmem>>, vector<256x1xf32>
    tpu.vector_store %arg10[%c0_19, %c0_20], %39 {strides = array<i32>} : memref<256x1xf32, #tpu.memory_space<vmem>>, vector<256x1xf32>,
    return
  }
  func.func @transform_0(%arg0: i32) -> i32 {
    %c0_i32 = arith.constant 0 : i32
    %c0_i32_0 = arith.constant 0 : i32
    return %c0_i32 : i32
  }
  func.func @transform_1(%arg0: i32) -> i32 {
    %c0_i32 = arith.constant 0 : i32
    %c0_i32_0 = arith.constant 0 : i32
    return %c0_i32 : i32
  }
  func.func @transform_2(%arg0: i32) -> i32 {
    %c0_i32 = arith.constant 0 : i32
    %c0_i32_0 = arith.constant 0 : i32
    return %c0_i32 : i32
  }
  func.func @transform_3(%arg0: i32) -> (i32, i32) {
    %c0_i32 = arith.constant 0 : i32
    %c0_i32_0 = arith.constant 0 : i32
    return %arg0, %c0_i32 : i32, i32
  }
  func.func @transform_4(%arg0: i32) -> (i32, i32) {
    %c0_i32 = arith.constant 0 : i32
    %c0_i32_0 = arith.constant 0 : i32
    %c0_i32_1 = arith.constant 0 : i32
    return %c0_i32, %c0_i32_0 : i32, i32
  }
  func.func @transform_5(%arg0: i32) -> (i32, i32) {
    %c0_i32 = arith.constant 0 : i32
    %c0_i32_0 = arith.constant 0 : i32
    %c0_i32_1 = arith.constant 0 : i32
    return %c0_i32, %c0_i32_0 : i32, i32
  }
  func.func @transform_6(%arg0: i32) -> (i32, i32) {
    %c0_i32 = arith.constant 0 : i32
    %c0_i32_0 = arith.constant 0 : i32
    %c0_i32_1 = arith.constant 0 : i32
    return %c0_i32, %c0_i32_0 : i32, i32
  }
  func.func @transform_7(%arg0: i32) -> (i32, i32) {
    %c0_i32 = arith.constant 0 : i32
    %c0_i32_0 = arith.constant 0 : i32
    %c0_i32_1 = arith.constant 0 : i32
    return %c0_i32, %c0_i32_0 : i32, i32
  }
  func.func @transform_8(%arg0: i32) -> (i32, i32) {
    %c0_i32 = arith.constant 0 : i32
    %c0_i32_0 = arith.constant 0 : i32
    %c0_i32_1 = arith.constant 0 : i32
    return %c0_i32, %c0_i32_0 : i32, i32
  }
  func.func @transform_9(%arg0: i32) -> (i32, i32) {
    %c0_i32 = arith.constant 0 : i32
    %c0_i32_0 = arith.constant 0 : i32
    return %arg0, %c0_i32 : i32, i32
  }
}

</mosaic_0001>

<bundles_post_ra>
// kernel: discriminator_forward.1
= control target key start
LH: loop header
LB: loop body
LE: loop exit
PB: predicated region body
PF: predicated region fallthrough
CT: control target
= control target key end

     0   :  { %16 = vsyncpa [#allocation5], 0  ;;  %s2215_s0 = inlined_call_operand.vmem [shape: f32[2], index: 0, kind: input, shape index: {}]   ;;  %s2216_s1 = inlined_call_operand.<no memory space> [shape: f32[1], index: 1, kind: input, shape index: {}]   ;;  %s2217_s2 = inlined_call_operand.<no memory space> [shape: f32[1], index: 2, kind: input, shape index: {}]   ;;  %s2218_s3 = inlined_call_operand.vmem [shape: bf16[256,64], index: 3, kind: input, shape index: {}]   ;;  %s2219_s4 = inlined_call_operand.vmem [shape: bf16[32,128], index: 4, kind: input, shape index: {}]   ;;  %s2220_s5 = inlined_call_operand.vmem [shape: f32[1,128], index: 5, kind: input, shape index: {}]   ;;  %s2221_s6 = inlined_call_operand.vmem [shape: bf16[128,128], index: 6, kind: input, shape index: {}]   ;;  %s2222_s7 = inlined_call_operand.vmem [shape: f32[1,128], index: 7, kind: input, shape index: {}]   ;;  %s2223_s8 = inlined_call_operand.vmem [shape: f32[1,128], index: 8, kind: input, shape index: {}]   ;;  %s2224_s9 = inlined_call_operand.vmem [shape: f32[256,1], index: 9, kind: output, shape index: {}]  }
   0x1   :  { %s23_s11 = sshll.u32 %s2215_s0, 4  ;;  %s24_s11 = int_to_ptr.vmem [resolvable:$true] %s23_s11 }
   0x2   :  { %s1405_s12 = scalar_lea.vmem %s24_s11, 16  ;;  %p1410_p1 = scmp.lt.s32.totalorder %s24_s11, %s24_s11 }
   0x3   :  { %p1406_p0 = scmp.ne.s32.totalorder %s24_s11, %s1405_s12  ;;  %p1411_p2 = scmp.lt.s32.totalorder %s1405_s12, %s1405_s12 }
   0x5   :  { %p1412_p3 = por %p1411_p2, %p1410_p1 }
   0x7   :  { %p1413_p4 = pnand %p1412_p3, %p1406_p0 }
   0x9   :  { %1416 = shalt.err (!%p1413_p4)
}
   0xa   :  { %s1419_s13 = smov [#allocation4]  }
   0xb   :  { %26 = dma.vmem_to_smem %s24_s11, 16, %s1419_s13, [#allocation5]  }
   0xc   :  { %1417 = dma.done.wait [#allocation5], 16  }
   0xd   :  { %1418 = vsyncadd [#allocation5], 4294967280 }
   0xe   :  { %46 = sfence }
   0xf   :  { %v1477_v0 = vld [vmem:[%s2218_s3 + $0x8] sm:$0xff]   ;;  %s1142_s16 = sld [smem:[#allocation4 + $0x1]]  ;;  %v1482_v1 = vld [vmem:[%s2218_s3] sm:$0xff]   ;;  %v1491_v6 = vld [vmem:[%s2218_s3 + $0x10] sm:$0xff]   ;;  %s1420_s26 = smov 96   ;;  %vm445_vm0 = vcmask 261120  }
  0x10   :  { %v1178_v2 = vunpack.c.l.bf16 %v1477_v0  ;;  %v1174_v3 = vunpack.c.l.bf16 %v1482_v1  ;;  %v1179_v4 = vunpack.c.h.bf16 %v1477_v0  ;;  %v1175_v5 = vunpack.c.h.bf16 %v1482_v1  ;;  %v1395_v8 = vld [vmem:[%s2219_s4] sm:$0xff]   ;;  %v1396_v11 = vld [vmem:[%s2219_s4 + $0x8] sm:$0xff]   ;;  %v1510_v12 = vld [vmem:[%s2218_s3 + $0x18] sm:$0xff]   ;;  %s112_s18 = sld [smem:[#allocation4]] }
  0x11   :  { %1293 = vmatprep.subr.bf16.mxu0 %v1395_v8  ;;  %v1183_v15 = vunpack.c.h.bf16 %v1491_v6  ;;  %v1182_v16 = vunpack.c.l.bf16 %v1491_v6  ;;  %v1187_v19 = vunpack.c.h.bf16 %v1510_v12  ;;  %v1186_v20 = vunpack.c.l.bf16 %v1510_v12  ;;  %v1535_v21 = vld [vmem:[%s2218_s3 + $0x20] sm:$0xff]   ;;  %v1550_v26 = vld [vmem:[%s2218_s3 + $0x28] sm:$0xff]   ;;  %v1565_v31 = vld [vmem:[%s2218_s3 + $0x30] sm:$0xff]  }
  0x12   :  { %1294 = vmatpush3.bf16.msra.mxu0 %v1395_v8  ;;  %v1191_v24 = vunpack.c.h.bf16 %v1535_v21  ;;  %v1190_v25 = vunpack.c.l.bf16 %v1535_v21  ;;  %v1195_v29 = vunpack.c.h.bf16 %v1550_v26  ;;  %v1194_v30 = vunpack.c.l.bf16 %v1550_v26  ;;  %v1580_v36 = vld [vmem:[%s2218_s3 + $0x38] sm:$0xff]   ;;  %v1595_v41 = vld [vmem:[%s2218_s3 + $0x40] sm:$0xff]   ;;  %v1610_v46 = vld [vmem:[%s2218_s3 + $0x48] sm:$0xff]  }
  0x13   :  { %1295 = vmatprep.subr.bf16.mxu0 %v1396_v11  ;;  %v1199_v34 = vunpack.c.h.bf16 %v1565_v31  ;;  %v1198_v35 = vunpack.c.l.bf16 %v1565_v31  ;;  %v1203_v39 = vunpack.c.h.bf16 %v1580_v36  ;;  %v1202_v40 = vunpack.c.l.bf16 %v1580_v36  ;;  %v1625_v51 = vld [vmem:[%s2218_s3 + $0x50] sm:$0xff]   ;;  %v1640_v56 = vld [vmem:[%s2218_s3 + $0x58] sm:$0xff]   ;;  %v1655_v61 = vld [vmem:[%s2218_s3 + $0x60] sm:$0xff]  }
  0x14   :  { %v1207_v44 = vunpack.c.h.bf16 %v1595_v41  ;;  %v1206_v45 = vunpack.c.l.bf16 %v1595_v41  ;;  %v1211_v49 = vunpack.c.h.bf16 %v1610_v46  ;;  %v1210_v50 = vunpack.c.l.bf16 %v1610_v46 }
  0x15   :  { %v1493_v7 = vstv %s1142_s16  ;;  %v1215_v54 = vunpack.c.h.bf16 %v1625_v51  ;;  %v1214_v55 = vunpack.c.l.bf16 %v1625_v51  ;;  %v1219_v59 = vunpack.c.h.bf16 %v1640_v56 }
  0x16   :  { %v150_v9 = vmul.f32 %v1178_v2, %v1493_v7  ;;  %v148_v10 = vmul.f32 %v1174_v3, %v1493_v7  ;;  %v151_v13 = vmul.f32 %v1179_v4, %v1493_v7  ;;  %v149_v14 = vmul.f32 %v1175_v5, %v1493_v7  ;;  %1296 = vmatpush3.bf16.msra.mxu0 %v1396_v11 }
  0x17   :  { %v153_v17 = vmul.f32 %v1183_v15, %v1493_v7  ;;  %v152_v18 = vmul.f32 %v1182_v16, %v1493_v7  ;;  %v155_v22 = vmul.f32 %v1187_v19, %v1493_v7  ;;  %v154_v23 = vmul.f32 %v1186_v20, %v1493_v7 }
  0x18   :  { %216 = vrot.lane.b32.xlu1 %v150_v9, %s1420_s26  ;;  %212 = vrot.lane.b32.xlu0 %v148_v10, %s1420_s26  ;;  %v157_v27 = vmul.f32 %v1191_v24, %v1493_v7  ;;  %v156_v28 = vmul.f32 %v1190_v25, %v1493_v7  ;;  %v159_v32 = vmul.f32 %v1195_v29, %v1493_v7  ;;  %v1218_v60 = vunpack.c.l.bf16 %v1640_v56  ;;  %v1670_v10 = vld [vmem:[%s2218_s3 + $0x68] sm:$0xff]  }
  0x19   :  { %v158_v33 = vmul.f32 %v1194_v30, %v1493_v7  ;;  %v161_v37 = vmul.f32 %v1199_v34, %v1493_v7  ;;  %v160_v38 = vmul.f32 %v1198_v35, %v1493_v7  ;;  %v163_v42 = vmul.f32 %v1203_v39, %v1493_v7 }
  0x1a   :  { %v162_v43 = vmul.f32 %v1202_v40, %v1493_v7  ;;  %v165_v47 = vmul.f32 %v1207_v44, %v1493_v7  ;;  %v164_v48 = vmul.f32 %v1206_v45, %v1493_v7  ;;  %v167_v52 = vmul.f32 %v1211_v49, %v1493_v7 }
  0x1b   :  { %v166_v53 = vmul.f32 %v1210_v50, %v1493_v7  ;;  %v169_v57 = vmul.f32 %v1215_v54, %v1493_v7  ;;  %v168_v58 = vmul.f32 %v1214_v55, %v1493_v7  ;;  %v171_v62 = vmul.f32 %v1219_v59, %v1493_v7 }
  0x1c   :  { %218 = vrot.lane.b32.xlu1 %v151_v13, %s1420_s26  ;;  %214 = vrot.lane.b32.xlu0 %v149_v14, %s1420_s26  ;;  %v170_v63 = vmul.f32 %v1218_v60, %v1493_v7  ;;  %v1223_v8 = vunpack.c.h.bf16 %v1655_v61  ;;  %v1222_v9 = vunpack.c.l.bf16 %v1655_v61  ;;  %v1227_v14 = vunpack.c.h.bf16 %v1670_v10 }
  0x1d   :  { %v2230_v61 = vunpack.c.l.bf16 %v1670_v10  ;;  %vm1104_vm1 = vcmask 7168  }
  0x1e   :  { %v173_v11 = vmul.f32 %v1223_v8, %v1493_v7  ;;  %v172_v13 = vmul.f32 %v1222_v9, %v1493_v7 }
  0x20   :  { %222 = vrot.lane.b32.xlu1 %v153_v17, %s1420_s26  ;;  %220 = vrot.lane.b32.xlu0 %v152_v18, %s1420_s26  ;;  %v2229_v17 = vunpack.c.l.bf16 %v1670_v10  ;;  %v1685_v18 = vld [vmem:[%s2218_s3 + $0x70] sm:$0xff]  }
  0x21   :  { %v2232_v10 = vunpack.c.l.bf16 %v1685_v18 }
  0x24   :  { %226 = vrot.lane.b32.xlu1 %v155_v22, %s1420_s26  ;;  %224 = vrot.lane.b32.xlu0 %v154_v23, %s1420_s26  ;;  %v175_v22 = vmul.f32 %v1227_v14, %v1493_v7  ;;  %v174_v23 = vmul.f32 %v2229_v17, %v1493_v7 }
  0x28   :  { %230 = vrot.lane.b32.xlu1 %v157_v27, %s1420_s26  ;;  %228 = vrot.lane.b32.xlu0 %v156_v28, %s1420_s26  ;;  %v2228_v27 = vunpack.c.h.bf16 %v1685_v18  ;;  %v2227_v28 = vunpack.c.l.bf16 %v1685_v18 }
  0x2c   :  { %234 = vrot.lane.b32.xlu1 %v159_v32, %s1420_s26  ;;  %232 = vrot.lane.b32.xlu0 %v158_v33, %s1420_s26  ;;  %v1700_v32 = vld [vmem:[%s2218_s3 + $0x78] sm:$0xff]   ;;  %v177_v33 = vmul.f32 %v2228_v27, %v1493_v7 }
  0x30   :  { %238 = vrot.lane.b32.xlu1 %v161_v37, %s1420_s26  ;;  %236 = vrot.lane.b32.xlu0 %v160_v38, %s1420_s26  ;;  %v176_v37 = vmul.f32 %v2227_v28, %v1493_v7  ;;  %v2226_v38 = vunpack.c.h.bf16 %v1700_v32 }
  0x34   :  { %242 = vrot.lane.b32.xlu1 %v163_v42, %s1420_s26  ;;  %240 = vrot.lane.b32.xlu0 %v162_v43, %s1420_s26  ;;  %v2225_v42 = vunpack.c.l.bf16 %v1700_v32  ;;  %v179_v43 = vmul.f32 %v2226_v38, %v1493_v7 }
  0x38   :  { %246 = vrot.lane.b32.xlu1 %v165_v47, %s1420_s26  ;;  %244 = vrot.lane.b32.xlu0 %v164_v48, %s1420_s26  ;;  %v178_v47 = vmul.f32 %v2225_v42, %v1493_v7  ;;  %v1723_v48 = vld [vmem:[%s2221_s6] sm:$0xff]   ;;  %v1739_v7 = vld [vmem:[%s2221_s6 + $0x10] sm:$0xff]  }
  0x39   :  { %1329 = vmatprep.subr.bf16.mxu0 %v1723_v48  ;;  %1377 = vmatprep.subr.bf16.mxu1 %v1723_v48 }
  0x3a   :  { %1385 = vmatpush3.bf16.msra.mxu1 %v1723_v48 }
  0x3c   :  { %250 = vrot.lane.b32.xlu1 %v167_v52, %s1420_s26  ;;  %248 = vrot.lane.b32.xlu0 %v166_v53, %s1420_s26  ;;  %v1730_v52 = vld [vmem:[%s2221_s6 + $0x8] sm:$0xff]   ;;  %v1746_v53 = vld [vmem:[%s2221_s6 + $0x18] sm:$0xff]  }
  0x3d   :  { %1378 = vmatprep.subr.bf16.mxu1 %v1730_v52 }
  0x3e   :  { %1386 = vmatpush3.bf16.msra.mxu1 %v1730_v52 }
  0x3f   :  { %1379 = vmatprep.subr.bf16.mxu1 %v1739_v7 }
  0x40   :  { %254 = vrot.lane.b32.xlu1 %v169_v57, %s1420_s26  ;;  %252 = vrot.lane.b32.xlu0 %v168_v58, %s1420_s26  ;;  %v1753_v57 = vld [vmem:[%s2221_s6 + $0x20] sm:$0xff]   ;;  %v1760_v58 = vld [vmem:[%s2221_s6 + $0x28] sm:$0xff]  }
  0x42   :  { %1387 = vmatpush3.bf16.msra.mxu1 %v1739_v7 }
  0x43   :  { %1380 = vmatprep.subr.bf16.mxu1 %v1746_v53 }
  0x44   :  { %258 = vrot.lane.b32.xlu1 %v171_v62, %s1420_s26  ;;  %256 = vrot.lane.b32.xlu0 %v170_v63, %s1420_s26  ;;  %v1767_v62 = vld [vmem:[%s2221_s6 + $0x30] sm:$0xff]   ;;  %v1772_v63 = vstv %s112_s18 }
  0x45   :  { %v118_v0 = vmul.f32 %v1182_v16, %v1772_v63  ;;  %v122_v12 = vmul.f32 %v1190_v25, %v1772_v63  ;;  %v125_v21 = vmul.f32 %v1195_v29, %v1772_v63  ;;  %v124_v25 = vmul.f32 %v1194_v30, %v1772_v63 }
  0x46   :  { %1388 = vmatpush3.bf16.msra.mxu1 %v1746_v53  ;;  %v127_v26 = vmul.f32 %v1199_v34, %v1772_v63  ;;  %v126_v30 = vmul.f32 %v1198_v35, %v1772_v63  ;;  %v129_v31 = vmul.f32 %v1203_v39, %v1772_v63  ;;  %v128_v35 = vmul.f32 %v1202_v40, %v1772_v63 }
  0x47   :  { %1381 = vmatprep.subr.bf16.mxu1 %v1753_v57  ;;  %v131_v36 = vmul.f32 %v1207_v44, %v1772_v63  ;;  %v130_v40 = vmul.f32 %v1206_v45, %v1772_v63  ;;  %v133_v41 = vmul.f32 %v1211_v49, %v1772_v63  ;;  %v132_v45 = vmul.f32 %v1210_v50, %v1772_v63 }
  0x48   :  { %262 = vrot.lane.b32.xlu1 %v173_v11, %s1420_s26  ;;  %260 = vrot.lane.b32.xlu0 %v172_v13, %s1420_s26  ;;  %v116_v11 = vmul.f32 %v1178_v2, %v1772_v63  ;;  %v114_v13 = vmul.f32 %v1174_v3, %v1772_v63  ;;  %v115_v2 = vmul.f32 %v1175_v5, %v1772_v63 }
  0x49   :  { %v135_v46 = vmul.f32 %v1215_v54, %v1772_v63  ;;  %v134_v50 = vmul.f32 %v1214_v55, %v1772_v63  ;;  %v137_v51 = vmul.f32 %v1219_v59, %v1772_v63  ;;  %v136_v55 = vmul.f32 %v1218_v60, %v1772_v63 }
  0x4a   :  { %1389 = vmatpush3.bf16.msra.mxu1 %v1753_v57  ;;  %v139_v59 = vmul.f32 %v1223_v8, %v1772_v63  ;;  %v138_v56 = vmul.f32 %v1222_v9, %v1772_v63  ;;  %v141_v8 = vmul.f32 %v1227_v14, %v1772_v63  ;;  %v140_v9 = vmul.f32 %v2230_v61, %v1772_v63 }
  0x4b   :  { %1382 = vmatprep.subr.bf16.mxu1 %v1760_v58  ;;  %v2231_v14 = vunpack.c.h.bf16 %v1685_v18  ;;  %v2234_v18 = vunpack.c.l.bf16 %v1700_v32 }
  0x4c   :  { %266 = vrot.lane.b32.xlu1 %v175_v22, %s1420_s26  ;;  %264 = vrot.lane.b32.xlu0 %v174_v23, %s1420_s26  ;;  %v1783_v22 = vstv %s2216_s1 }
  0x4e   :  { %1390 = vmatpush3.bf16.msra.mxu1 %v1760_v58 }
  0x4f   :  { %1383 = vmatprep.subr.bf16.mxu1 %v1767_v62 }
  0x50   :  { %270 = vrot.lane.b32.xlu1 %v177_v33, %s1420_s26  ;;  %268 = vrot.lane.b32.xlu0 %v176_v37, %s1420_s26 }
  0x52   :  { %1391 = vmatpush3.bf16.msra.mxu1 %v1767_v62 }
  0x54   :  { %274 = vrot.lane.b32.xlu1 %v179_v43, %s1420_s26  ;;  %272 = vrot.lane.b32.xlu0 %v178_v47, %s1420_s26  ;;  %v117_v47 = vmul.f32 %v1179_v4, %v1772_v63 }
  0x8a   :  { %v217_v23 = vpop.permute.xlu1 %216  ;;  %v213_v33 = vpop.permute.xlu0 %212 }
  0x8b   :  { %v310_v37 = vadd.f32 %v217_v23, %v116_v11  ;;  %v308_v43 = vadd.f32 %v213_v33, %v114_v13  ;;  %v119_v11 = vmul.f32 %v1183_v15, %v1772_v63  ;;  %v120_v15 = vmul.f32 %v1186_v20, %v1772_v63 }
  0x8d   :  { %v344_v42 = vadd.f32 %v1783_v22, %v310_v37  ;;  %v342_v3 = vadd.f32 %v1783_v22, %v308_v43 }
  0x8e   :  { %v219_v38 = vpop.permute.xlu1 %218  ;;  %v215_v28 = vpop.permute.xlu0 %214 }
  0x8f   :  { %v311_v27 = vadd.f32 %v219_v38, %v117_v47  ;;  %v309_v17 = vadd.f32 %v215_v28, %v115_v2  ;;  %v376_v5 = vmax.f32 %v344_v42, 0.0  ;;  %v374_v13 = vmax.f32 %v342_v3, 0.0 }
  0x90   :  { %v121_v28 = vmul.f32 %v1187_v19, %v1772_v63  ;;  %v123_v19 = vmul.f32 %v1191_v24, %v1772_v63 }
  0x91   :  { %v345_v4 = vadd.f32 %v1783_v22, %v311_v27  ;;  %v343_v1 = vadd.f32 %v1783_v22, %v309_v17 }
  0x92   :  { %v223_v23 = vpop.permute.xlu1 %222  ;;  %v221_v33 = vpop.permute.xlu0 %220 }
  0x93   :  { %v377_v38 = vmax.f32 %v345_v4, 0.0  ;;  %v375_v37 = vmax.f32 %v343_v1, 0.0  ;;  %v313_v6 = vadd.f32 %v223_v23, %v119_v11  ;;  %v312_v16 = vadd.f32 %v221_v33, %v118_v0 }
  0x95   :  { %v407_v27 = vpack.c.bf16 %v377_v38, %v376_v5  ;;  %v347_v17 = vadd.f32 %v1783_v22, %v313_v6  ;;  %v346_v42 = vadd.f32 %v1783_v22, %v312_v16  ;;  %v406_v43 = vpack.c.bf16 %v375_v37, %v374_v13 }
  0x96   :  { %v227_v47 = vpop.permute.xlu1 %226  ;;  %v225_v2 = vpop.permute.xlu0 %224 }
  0x97   :  { %v379_v20 = vmax.f32 %v347_v17, 0.0  ;;  %v378_v3 = vmax.f32 %v346_v42, 0.0  ;;  %v315_v11 = vadd.f32 %v227_v47, %v121_v28  ;;  %v314_v0 = vadd.f32 %v225_v2, %v120_v15  ;;  %1297 = vmatprep.mubr.msk.bf16.mxu0 %vm445_vm0, %v406_v43 }
  0x98   :  { %1298 = vmatmul.mubr.msk.bf16.vlgmr.msra.gmra.mrb[0].mxu0 %vm445_vm0, %v407_v27 }
  0x99   :  { %v408_v4 = vpack.c.bf16 %v379_v20, %v378_v3  ;;  %v349_v1 = vadd.f32 %v1783_v22, %v315_v11  ;;  %v348_v5 = vadd.f32 %v1783_v22, %v314_v0  ;;  %1330 = vmatpush3.bf16.msra.mxu0 %v1723_v48 }
  0x9a   :  { %v231_v24 = vpop.permute.xlu1 %230  ;;  %v229_v13 = vpop.permute.xlu0 %228  ;;  %1331 = vmatprep.subr.bf16.mxu0 %v1730_v52 }
  0x9b   :  { %v381_v23 = vmax.f32 %v349_v1, 0.0  ;;  %v380_v33 = vmax.f32 %v348_v5, 0.0  ;;  %v317_v28 = vadd.f32 %v231_v24, %v123_v19  ;;  %v316_v15 = vadd.f32 %v229_v13, %v122_v12  ;;  %1301 = vmatprep.mubr.msk.bf16.mxu0 %vm445_vm0, %v408_v4 }
  0x9d   :  { %v409_v38 = vpack.c.bf16 %v381_v23, %v380_v33  ;;  %v351_v48 = vadd.f32 %v1783_v22, %v317_v28  ;;  %v350_v37 = vadd.f32 %v1783_v22, %v316_v15  ;;  %1332 = vmatpush3.bf16.msra.mxu0 %v1730_v52 }
  0x9e   :  { %v235_v29 = vpop.permute.xlu1 %234  ;;  %v233_v6 = vpop.permute.xlu0 %232  ;;  %1333 = vmatprep.subr.bf16.mxu0 %v1739_v7 }
  0x9f   :  { %v383_v16 = vmax.f32 %v351_v48, 0.0  ;;  %v382_v27 = vmax.f32 %v350_v37, 0.0  ;;  %v319_v17 = vadd.f32 %v235_v29, %v125_v21  ;;  %v318_v42 = vadd.f32 %v233_v6, %v124_v25 }
  0xa0   :  { %1302 = vmatmul.mubr.msk.bf16.gmra.mrb[4].mxu0 %vm445_vm0, %v409_v38 }
  0xa1   :  { %v410_v43 = vpack.c.bf16 %v383_v16, %v382_v27  ;;  %v353_v52 = vadd.f32 %v1783_v22, %v319_v17  ;;  %v352_v47 = vadd.f32 %v1783_v22, %v318_v42  ;;  %1334 = vmatpush3.bf16.msra.mxu0 %v1739_v7 }
  0xa2   :  { %v239_v34 = vpop.permute.xlu1 %238  ;;  %v237_v2 = vpop.permute.xlu0 %236  ;;  %1335 = vmatprep.subr.bf16.mxu0 %v1746_v53 }
  0xa3   :  { %v385_v19 = vmax.f32 %v353_v52, 0.0  ;;  %v384_v12 = vmax.f32 %v352_v47, 0.0  ;;  %v321_v20 = vadd.f32 %v239_v34, %v127_v26  ;;  %v320_v3 = vadd.f32 %v237_v2, %v126_v30  ;;  %1305 = vmatprep.mubr.msk.bf16.mxu0 %vm445_vm0, %v410_v43 }
  0xa5   :  { %v411_v11 = vpack.c.bf16 %v385_v19, %v384_v12  ;;  %v355_v7 = vadd.f32 %v1783_v22, %v321_v20  ;;  %v354_v0 = vadd.f32 %v1783_v22, %v320_v3  ;;  %1336 = vmatpush3.bf16.msra.mxu0 %v1746_v53 }
  0xa6   :  { %v243_v39 = vpop.permute.xlu1 %242  ;;  %v241_v4 = vpop.permute.xlu0 %240  ;;  %1337 = vmatprep.subr.bf16.mxu0 %v1753_v57 }
  0xa7   :  { %v387_v1 = vmax.f32 %v355_v7, 0.0  ;;  %v386_v5 = vmax.f32 %v354_v0, 0.0  ;;  %v323_v24 = vadd.f32 %v243_v39, %v129_v31  ;;  %v322_v13 = vadd.f32 %v241_v4, %v128_v35 }
  0xa8   :  { %1306 = vmatmul.mubr.msk.bf16.gmra.mrb[8].mxu0 %vm445_vm0, %v411_v11 }
  0xa9   :  { %v412_v21 = vpack.c.bf16 %v387_v1, %v386_v5  ;;  %v357_v53 = vadd.f32 %v1783_v22, %v323_v24  ;;  %v356_v25 = vadd.f32 %v1783_v22, %v322_v13  ;;  %1338 = vmatpush3.bf16.msra.mxu0 %v1753_v57 }
  0xaa   :  { %v247_v44 = vpop.permute.xlu1 %246  ;;  %v245_v23 = vpop.permute.xlu0 %244  ;;  %1339 = vmatprep.subr.bf16.mxu0 %v1760_v58 }
  0xab   :  { %v389_v33 = vmax.f32 %v357_v53, 0.0  ;;  %v388_v28 = vmax.f32 %v356_v25, 0.0  ;;  %v325_v15 = vadd.f32 %v247_v44, %v131_v36  ;;  %v324_v38 = vadd.f32 %v245_v23, %v130_v40  ;;  %1309 = vmatprep.mubr.msk.bf16.mxu0 %vm445_vm0, %v412_v21 }
  0xac   :  { %v143_v44 = vmul.f32 %v2231_v14, %v1772_v63  ;;  %v142_v23 = vmul.f32 %v2232_v10, %v1772_v63 }
  0xad   :  { %v413_v48 = vpack.c.bf16 %v389_v33, %v388_v28  ;;  %v359_v57 = vadd.f32 %v1783_v22, %v325_v15  ;;  %v358_v37 = vadd.f32 %v1783_v22, %v324_v38  ;;  %1340 = vmatpush3.bf16.msra.mxu0 %v1760_v58 }
  0xae   :  { %v251_v49 = vpop.permute.xlu1 %250  ;;  %v249_v29 = vpop.permute.xlu0 %248  ;;  %1341 = vmatprep.subr.bf16.mxu0 %v1767_v62 }
  0xaf   :  { %v391_v6 = vmax.f32 %v359_v57, 0.0  ;;  %v390_v26 = vmax.f32 %v358_v37, 0.0  ;;  %v327_v30 = vadd.f32 %v251_v49, %v133_v41  ;;  %v326_v16 = vadd.f32 %v249_v29, %v132_v45 }
  0xb0   :  { %1310 = vmatmul.mubr.msk.bf16.gmra.mrb[12].mxu0 %vm445_vm0, %v413_v48  ;;  %v2233_v49 = vunpack.c.h.bf16 %v1700_v32 }
  0xb1   :  { %v414_v27 = vpack.c.bf16 %v391_v6, %v390_v26  ;;  %v361_v58 = vadd.f32 %v1783_v22, %v327_v30  ;;  %v360_v17 = vadd.f32 %v1783_v22, %v326_v16  ;;  %1342 = vmatpush3.bf16.msra.mxu0 %v1767_v62 }
  0xb2   :  { %v255_v54 = vpop.permute.xlu1 %254  ;;  %v253_v42 = vpop.permute.xlu0 %252  ;;  %v145_v29 = vmul.f32 %v2233_v49, %v1772_v63 }
  0xb3   :  { %v393_v43 = vmax.f32 %v361_v58, 0.0  ;;  %v392_v52 = vmax.f32 %v360_v17, 0.0  ;;  %v329_v47 = vadd.f32 %v255_v54, %v135_v46  ;;  %v328_v34 = vadd.f32 %v253_v42, %v134_v50  ;;  %1313 = vmatprep.mubr.msk.bf16.mxu0 %vm445_vm0, %v414_v27 }
  0xb4   :  { %v144_v46 = vmul.f32 %v2234_v18, %v1772_v63 }
  0xb5   :  { %v415_v2 = vpack.c.bf16 %v393_v43, %v392_v52  ;;  %v363_v31 = vadd.f32 %v1783_v22, %v329_v47  ;;  %v362_v62 = vadd.f32 %v1783_v22, %v328_v34 }
  0xb6   :  { %v259_v35 = vpop.permute.xlu1 %258  ;;  %v257_v19 = vpop.permute.xlu0 %256 }
  0xb7   :  { %v395_v60 = vmax.f32 %v363_v31, 0.0  ;;  %v394_v12 = vmax.f32 %v362_v62, 0.0  ;;  %v331_v20 = vadd.f32 %v259_v35, %v137_v51  ;;  %v330_v3 = vadd.f32 %v257_v19, %v136_v55  ;;  %v1404_v31 = vld [vmem:[%s2221_s6 + $0x38] sm:$0xff]   ;;  %v1942_v62 = vld [vmem:[%s2220_s5] ss:$0 sm:$0xff] }
  0xb8   :  { %1314 = vmatmul.mubr.msk.bf16.gmra.mrb[16].mxu0 %vm445_vm0, %v415_v2  ;;  %1343 = vmatprep.subr.bf16.mxu0 %v1404_v31 }
  0xb9   :  { %v416_v11 = vpack.c.bf16 %v395_v60, %v394_v12  ;;  %v365_v7 = vadd.f32 %v1783_v22, %v331_v20  ;;  %v364_v0 = vadd.f32 %v1783_v22, %v330_v3  ;;  %1384 = vmatprep.subr.bf16.mxu1 %v1404_v31  ;;  %1344 = vmatpush3.bf16.msra.mxu0 %v1404_v31 }
  0xba   :  { %v263_v39 = vpop.permute.xlu1 %262  ;;  %v261_v4 = vpop.permute.xlu0 %260  ;;  %1392 = vmatpush3.bf16.msra.mxu1 %v1404_v31 }
  0xbb   :  { %v397_v36 = vmax.f32 %v365_v7, 0.0  ;;  %v396_v40 = vmax.f32 %v364_v0, 0.0  ;;  %v333_v1 = vadd.f32 %v263_v39, %v139_v59  ;;  %v332_v5 = vadd.f32 %v261_v4, %v138_v56  ;;  %1317 = vmatprep.mubr.msk.bf16.mxu0 %vm445_vm0, %v416_v11 }
  0xbd   :  { %v417_v24 = vpack.c.bf16 %v397_v36, %v396_v40  ;;  %v367_v13 = vadd.f32 %v1783_v22, %v333_v1  ;;  %v366_v21 = vadd.f32 %v1783_v22, %v332_v5 }
  0xbe   :  { %v267_v53 = vpop.permute.xlu1 %266  ;;  %v265_v25 = vpop.permute.xlu0 %264 }
  0xbf   :  { %v399_v41 = vmax.f32 %v367_v13, 0.0  ;;  %v398_v45 = vmax.f32 %v366_v21, 0.0  ;;  %v335_v33 = vadd.f32 %v267_v53, %v141_v8  ;;  %v334_v28 = vadd.f32 %v265_v25, %v140_v9 }
  0xc0   :  { %1318 = vmatmul.mubr.msk.bf16.gmra.mrb[20].mxu0 %vm445_vm0, %v417_v24 }
  0xc1   :  { %v418_v15 = vpack.c.bf16 %v399_v41, %v398_v45  ;;  %v369_v38 = vadd.f32 %v1783_v22, %v335_v33  ;;  %v368_v48 = vadd.f32 %v1783_v22, %v334_v28 }
  0xc2   :  { %v271_v57 = vpop.permute.xlu1 %270  ;;  %v269_v37 = vpop.permute.xlu0 %268 }
  0xc3   :  { %v401_v50 = vmax.f32 %v369_v38, 0.0  ;;  %v400_v6 = vmax.f32 %v368_v48, 0.0  ;;  %v337_v26 = vadd.f32 %v271_v57, %v143_v44  ;;  %v336_v30 = vadd.f32 %v269_v37, %v142_v23  ;;  %1321 = vmatprep.mubr.msk.bf16.mxu0 %vm445_vm0, %v418_v15 }
  0xc5   :  { %v419_v16 = vpack.c.bf16 %v401_v50, %v400_v6  ;;  %v371_v27 = vadd.f32 %v1783_v22, %v337_v26  ;;  %v370_v58 = vadd.f32 %v1783_v22, %v336_v30 }
  0xc6   :  { %v275_v17 = vpop.permute.xlu1 %274  ;;  %v273_v54 = vpop.permute.xlu0 %272 }
  0xc7   :  { %v403_v42 = vmax.f32 %v371_v27, 0.0  ;;  %v402_v51 = vmax.f32 %v370_v58, 0.0  ;;  %v339_v55 = vadd.f32 %v275_v17, %v145_v29  ;;  %v338_v43 = vadd.f32 %v273_v54, %v144_v46 }
  0xc8   :  { %1322 = vmatmul.mubr.msk.bf16.gmra.mrb[24].mxu0 %vm445_vm0, %v419_v16 }
  0xc9   :  { %v420_v32 = vpack.c.bf16 %v403_v42, %v402_v51  ;;  %v373_v63 = vadd.f32 %v1783_v22, %v339_v55  ;;  %v372_v52 = vadd.f32 %v1783_v22, %v338_v43 }
  0xcb   :  { %v405_v47 = vmax.f32 %v373_v63, 0.0  ;;  %v404_v34 = vmax.f32 %v372_v52, 0.0  ;;  %1325 = vmatprep.mubr.msk.bf16.mxu0 %vm445_vm0, %v420_v32 }
  0xcd   :  { %v421_v2 = vpack.c.bf16 %v405_v47, %v404_v34 }
  0xd0   :  { %1326 = vmatmul.mubr.msk.bf16.gmra.mrb[28].mxu0 %vm445_vm0, %v421_v2 }
 0x16b   :  { %v1299_v22 = vpop.f32.mrb[0].mxu0 }
 0x16c   :  { %v537_v35 = vadd.f32 %v1299_v22, %v1942_v62  ;;  %v528_v19 = vpop.f32.mrb[1].mxu0 }
 0x16d   :  { %v529_v59 = vadd.f32 %v1942_v62, %v528_v19  ;;  %v1300_v56 = vpop.f32.mrb[2].mxu0 }
 0x16e   :  { %v540_v60 = vadd.f32 %v1300_v56, %v1942_v62  ;;  %v531_v12 = vpop.f32.mrb[3].mxu0  ;;  %v657_v3 = vmax.f32 %v537_v35, 0.0 }
 0x16f   :  { %v532_v20 = vadd.f32 %v1942_v62, %v531_v12  ;;  %v655_v7 = vmax.f32 %v529_v59, 0.0 }
 0x170   :  { %v658_v11 = vmax.f32 %v540_v60, 0.0 }
 0x171   :  { %v656_v0 = vmax.f32 %v532_v20, 0.0 }
 0x172   :  { %v688_v39 = vpack.c.bf16 %v658_v11, %v657_v3 }
 0x173   :  { %v687_v4 = vpack.c.bf16 %v656_v0, %v655_v7  ;;  %v1303_v8 = vpop.f32.mrb[4].mxu0 }
 0x174   :  { %v553_v61 = vadd.f32 %v1303_v8, %v1942_v62  ;;  %v544_v9 = vpop.f32.mrb[5].mxu0 }
 0x175   :  { %v545_v36 = vadd.f32 %v1942_v62, %v544_v9  ;;  %v1304_v40 = vpop.f32.mrb[6].mxu0  ;;  %1345 = vmatprep.mubr.bf16.mxu0 %v687_v4 }
 0x176   :  { %v661_v1 = vmax.f32 %v553_v61, 0.0  ;;  %v556_v5 = vadd.f32 %v1304_v40, %v1942_v62  ;;  %v547_v24 = vpop.f32.mrb[7].mxu0  ;;  %1346 = vmatmul.mubr.bf16.vlgmr.msra.gmra.mrb[32].mxu0 %v688_v39 }
 0x177   :  { %v548_v13 = vadd.f32 %v1942_v62, %v547_v24  ;;  %v659_v53 = vmax.f32 %v545_v36, 0.0 }
 0x178   :  { %v662_v21 = vmax.f32 %v556_v5, 0.0 }
 0x179   :  { %v660_v25 = vmax.f32 %v548_v13, 0.0 }
 0x17a   :  { %v690_v14 = vpack.c.bf16 %v662_v21, %v661_v1 }
 0x17b   :  { %v1307_v44 = vpop.f32.mrb[8].mxu0  ;;  %v689_v10 = vpack.c.bf16 %v660_v25, %v659_v53 }
 0x17c   :  { %v569_v23 = vadd.f32 %v1307_v44, %v1942_v62  ;;  %v560_v41 = vpop.f32.mrb[9].mxu0 }
 0x17d   :  { %v561_v45 = vadd.f32 %v1942_v62, %v560_v41  ;;  %v1308_v33 = vpop.f32.mrb[10].mxu0  ;;  %1349 = vmatprep.mubr.bf16.mxu1 %v689_v10 }
 0x17e   :  { %v665_v28 = vmax.f32 %v569_v23, 0.0  ;;  %v572_v15 = vadd.f32 %v1308_v33, %v1942_v62  ;;  %v563_v38 = vpop.f32.mrb[11].mxu0  ;;  %1350 = vmatmul.mubr.bf16.vlgmr.msra.gmra.mrb[0].mxu1 %v690_v14 }
 0x17f   :  { %v564_v48 = vadd.f32 %v1942_v62, %v563_v38  ;;  %v663_v37 = vmax.f32 %v561_v45, 0.0 }
 0x180   :  { %v666_v57 = vmax.f32 %v572_v15, 0.0 }
 0x181   :  { %v664_v49 = vmax.f32 %v564_v48, 0.0 }
 0x182   :  { %v692_v29 = vpack.c.bf16 %v666_v57, %v665_v28 }
 0x183   :  { %v691_v18 = vpack.c.bf16 %v664_v49, %v663_v37  ;;  %v1311_v46 = vpop.f32.mrb[12].mxu0 }
 0x184   :  { %v585_v50 = vadd.f32 %v1311_v46, %v1942_v62  ;;  %v576_v6 = vpop.f32.mrb[13].mxu0 }
 0x185   :  { %v577_v26 = vadd.f32 %v1942_v62, %v576_v6  ;;  %v1312_v30 = vpop.f32.mrb[14].mxu0  ;;  %1353 = vmatprep.mubr.bf16.mxu1 %v691_v18 }
 0x186   :  { %v669_v16 = vmax.f32 %v585_v50, 0.0  ;;  %v588_v27 = vadd.f32 %v1312_v30, %v1942_v62  ;;  %v579_v58 = vpop.f32.mrb[15].mxu0  ;;  %1354 = vmatmul.mubr.bf16.gmra.mrb[4].mxu1 %v692_v29 }
 0x187   :  { %v580_v17 = vadd.f32 %v1942_v62, %v579_v58  ;;  %v667_v42 = vmax.f32 %v577_v26, 0.0  ;;  %v1979_v58 = vld [vmem:[%s2222_s7] ss:$0 sm:$0xff] }
 0x188   :  { %v670_v54 = vmax.f32 %v588_v27, 0.0 }
 0x189   :  { %v668_v51 = vmax.f32 %v580_v17, 0.0 }
 0x18a   :  { %v694_v55 = vpack.c.bf16 %v670_v54, %v669_v16 }
 0x18b   :  { %v693_v43 = vpack.c.bf16 %v668_v51, %v667_v42  ;;  %v1315_v32 = vpop.f32.mrb[16].mxu0 }
 0x18c   :  { %v601_v63 = vadd.f32 %v1315_v32, %v1942_v62  ;;  %v592_v52 = vpop.f32.mrb[17].mxu0 }
 0x18d   :  { %v593_v47 = vadd.f32 %v1942_v62, %v592_v52  ;;  %v1316_v34 = vpop.f32.mrb[18].mxu0  ;;  %1357 = vmatprep.mubr.bf16.mxu1 %v693_v43 }
 0x18e   :  { %v673_v2 = vmax.f32 %v601_v63, 0.0  ;;  %v604_v31 = vadd.f32 %v1316_v34, %v1942_v62  ;;  %v595_v22 = vpop.f32.mrb[19].mxu0  ;;  %1358 = vmatmul.mubr.bf16.gmra.mrb[8].mxu1 %v694_v55 }
 0x18f   :  { %v596_v35 = vadd.f32 %v1942_v62, %v595_v22  ;;  %v671_v59 = vmax.f32 %v593_v47, 0.0 }
 0x190   :  { %v674_v19 = vmax.f32 %v604_v31, 0.0 }
 0x191   :  { %v672_v56 = vmax.f32 %v596_v35, 0.0 }
 0x192   :  { %v696_v60 = vpack.c.bf16 %v674_v19, %v673_v2 }
 0x193   :  { %v695_v12 = vpack.c.bf16 %v672_v56, %v671_v59  ;;  %v1319_v20 = vpop.f32.mrb[20].mxu0 }
 0x194   :  { %v617_v3 = vadd.f32 %v1319_v20, %v1942_v62  ;;  %v608_v11 = vpop.f32.mrb[21].mxu0 }
 0x195   :  { %v609_v7 = vadd.f32 %v1942_v62, %v608_v11  ;;  %v1320_v0 = vpop.f32.mrb[22].mxu0  ;;  %1361 = vmatprep.mubr.bf16.mxu1 %v695_v12 }
 0x196   :  { %v677_v39 = vmax.f32 %v617_v3, 0.0  ;;  %v620_v4 = vadd.f32 %v1320_v0, %v1942_v62  ;;  %v611_v8 = vpop.f32.mrb[23].mxu0  ;;  %1362 = vmatmul.mubr.bf16.gmra.mrb[12].mxu1 %v696_v60 }
 0x197   :  { %v612_v61 = vadd.f32 %v1942_v62, %v611_v8  ;;  %v675_v36 = vmax.f32 %v609_v7, 0.0 }
 0x198   :  { %v678_v9 = vmax.f32 %v620_v4, 0.0 }
 0x199   :  { %v676_v40 = vmax.f32 %v612_v61, 0.0 }
 0x19a   :  { %v698_v1 = vpack.c.bf16 %v678_v9, %v677_v39 }
 0x19b   :  { %v697_v5 = vpack.c.bf16 %v676_v40, %v675_v36  ;;  %v1323_v24 = vpop.f32.mrb[24].mxu0 }
 0x19c   :  { %v633_v13 = vadd.f32 %v1323_v24, %v1942_v62  ;;  %v624_v21 = vpop.f32.mrb[25].mxu0 }
 0x19d   :  { %v625_v53 = vadd.f32 %v1942_v62, %v624_v21  ;;  %v1324_v25 = vpop.f32.mrb[26].mxu0  ;;  %1365 = vmatprep.mubr.bf16.mxu1 %v697_v5 }
 0x19e   :  { %v681_v14 = vmax.f32 %v633_v13, 0.0  ;;  %v636_v44 = vadd.f32 %v1324_v25, %v1942_v62  ;;  %v627_v10 = vpop.f32.mrb[27].mxu0  ;;  %1366 = vmatmul.mubr.bf16.gmra.mrb[16].mxu1 %v698_v1 }
 0x19f   :  { %v628_v23 = vadd.f32 %v1942_v62, %v627_v10  ;;  %v679_v45 = vmax.f32 %v625_v53, 0.0 }
 0x1a0   :  { %v682_v41 = vmax.f32 %v636_v44, 0.0 }
 0x1a1   :  { %v680_v33 = vmax.f32 %v628_v23, 0.0 }
 0x1a2   :  { %v700_v28 = vpack.c.bf16 %v682_v41, %v681_v14 }
 0x1a3   :  { %v699_v15 = vpack.c.bf16 %v680_v33, %v679_v45  ;;  %v1327_v38 = vpop.f32.mrb[28].mxu0 }
 0x1a4   :  { %v649_v48 = vadd.f32 %v1327_v38, %v1942_v62  ;;  %v640_v57 = vpop.f32.mrb[29].mxu0 }
 0x1a5   :  { %v641_v37 = vadd.f32 %v1942_v62, %v640_v57  ;;  %v1328_v49 = vpop.f32.mrb[30].mxu0  ;;  %1369 = vmatprep.mubr.bf16.mxu1 %v699_v15 }
 0x1a6   :  { %v685_v29 = vmax.f32 %v649_v48, 0.0  ;;  %v652_v18 = vadd.f32 %v1328_v49, %v1942_v62  ;;  %v643_v46 = vpop.f32.mrb[31].mxu0  ;;  %1370 = vmatmul.mubr.bf16.gmra.mrb[20].mxu1 %v700_v28 }
 0x1a7   :  { %v644_v50 = vadd.f32 %v1942_v62, %v643_v46  ;;  %v683_v26 = vmax.f32 %v641_v37, 0.0  ;;  %v1986_v62 = vld [vmem:[%s2223_s8] ss:$0 sm:$0xff] }
 0x1a8   :  { %v686_v6 = vmax.f32 %v652_v18, 0.0 }
 0x1a9   :  { %v684_v30 = vmax.f32 %v644_v50, 0.0 }
 0x1aa   :  { %v702_v16 = vpack.c.bf16 %v686_v6, %v685_v29 }
 0x1ab   :  { %v701_v27 = vpack.c.bf16 %v684_v30, %v683_v26 }
 0x1ad   :  { %1373 = vmatprep.mubr.bf16.mxu1 %v701_v27 }
 0x1ae   :  { %1374 = vmatmul.mubr.bf16.gmra.mrb[24].mxu1 %v702_v16 }
 0x249   :  { %v1347_v17 = vpop.f32.mrb[32].mxu0 }
 0x24a   :  { %v817_v54 = vadd.f32 %v1347_v17, %v1979_v58  ;;  %v808_v42 = vpop.f32.mrb[33].mxu0 }
 0x24b   :  { %v809_v51 = vadd.f32 %v1979_v58, %v808_v42  ;;  %v1348_v55 = vpop.f32.mrb[34].mxu0 }
 0x24c   :  { %v937_v43 = vmax.f32 %v817_v54, 0.0  ;;  %v811_v32 = vpop.f32.mrb[35].mxu0  ;;  %v820_v47 = vadd.f32 %v1348_v55, %v1979_v58 }
 0x24d   :  { %v812_v63 = vadd.f32 %v1979_v58, %v811_v32  ;;  %v935_v52 = vmax.f32 %v809_v51, 0.0 }
 0x24e   :  { %v976_v34 = vmul.f32 %v1986_v62, %v937_v43  ;;  %v938_v35 = vmax.f32 %v820_v47, 0.0 }
 0x24f   :  { %v936_v2 = vmax.f32 %v812_v63, 0.0  ;;  %v974_v56 = vmul.f32 %v1986_v62, %v935_v52 }
 0x250   :  { %1010 = vadd.xlane.f32.xlu0 %v976_v34  ;;  %v977_v8 = vmul.f32 %v1986_v62, %v938_v35 }
 0x251   :  { %v1351_v31 = vpop.f32.mrb[0].mxu1  ;;  %v975_v22 = vmul.f32 %v1986_v62, %v936_v2 }
 0x252   :  { %v833_v19 = vadd.f32 %v1351_v31, %v1979_v58  ;;  %v824_v59 = vpop.f32.mrb[1].mxu1 }
 0x253   :  { %v825_v60 = vadd.f32 %v1979_v58, %v824_v59  ;;  %v1352_v12 = vpop.f32.mrb[2].mxu1  ;;  %1008 = vadd.xlane.f32.xlu1 %v975_v22 }
 0x254   :  { %v941_v20 = vmax.f32 %v833_v19, 0.0  ;;  %v836_v3 = vadd.f32 %v1352_v12, %v1979_v58  ;;  %v827_v11 = vpop.f32.mrb[3].mxu1  ;;  %1006 = vadd.xlane.f32.xlu0 %v974_v56 }
 0x255   :  { %v828_v7 = vadd.f32 %v1979_v58, %v827_v11  ;;  %v939_v0 = vmax.f32 %v825_v60, 0.0 }
 0x256   :  { %v942_v39 = vmax.f32 %v836_v3, 0.0  ;;  %v980_v4 = vmul.f32 %v1986_v62, %v941_v20 }
 0x257   :  { %v940_v61 = vmax.f32 %v828_v7, 0.0  ;;  %v978_v1 = vmul.f32 %v1986_v62, %v939_v0 }
 0x258   :  { %1018 = vadd.xlane.f32.xlu1 %v980_v4  ;;  %1012 = vadd.xlane.f32.xlu0 %v977_v8  ;;  %v981_v5 = vmul.f32 %v1986_v62, %v942_v39 }
 0x259   :  { %v1355_v9 = vpop.f32.mrb[4].mxu1  ;;  %v979_v14 = vmul.f32 %v1986_v62, %v940_v61 }
 0x25a   :  { %v849_v36 = vadd.f32 %v1355_v9, %v1979_v58  ;;  %v840_v40 = vpop.f32.mrb[5].mxu1 }
 0x25b   :  { %v841_v24 = vadd.f32 %v1979_v58, %v840_v40  ;;  %v1356_v13 = vpop.f32.mrb[6].mxu1 }
 0x25c   :  { %v945_v21 = vmax.f32 %v849_v36, 0.0  ;;  %v852_v53 = vadd.f32 %v1356_v13, %v1979_v58  ;;  %v843_v25 = vpop.f32.mrb[7].mxu1  ;;  %1014 = vadd.xlane.f32.xlu1 %v978_v1  ;;  %1020 = vadd.xlane.f32.xlu0 %v981_v5 }
 0x25d   :  { %v943_v44 = vmax.f32 %v841_v24, 0.0  ;;  %v844_v23 = vadd.f32 %v1979_v58, %v843_v25 }
 0x25e   :  { %v946_v10 = vmax.f32 %v852_v53, 0.0  ;;  %v984_v41 = vmul.f32 %v1986_v62, %v945_v21 }
 0x25f   :  { %v944_v33 = vmax.f32 %v844_v23, 0.0  ;;  %v982_v38 = vmul.f32 %v1986_v62, %v943_v44 }
 0x260   :  { %1026 = vadd.xlane.f32.xlu1 %v984_v41  ;;  %1016 = vadd.xlane.f32.xlu0 %v979_v14  ;;  %v985_v48 = vmul.f32 %v1986_v62, %v946_v10 }
 0x261   :  { %v1359_v45 = vpop.f32.mrb[8].mxu1  ;;  %v983_v30 = vmul.f32 %v1986_v62, %v944_v33 }
 0x262   :  { %v865_v28 = vadd.f32 %v1359_v45, %v1979_v58  ;;  %v856_v15 = vpop.f32.mrb[9].mxu1 }
 0x263   :  { %v857_v57 = vadd.f32 %v1979_v58, %v856_v15  ;;  %v1360_v37 = vpop.f32.mrb[10].mxu1 }
 0x264   :  { %v949_v49 = vmax.f32 %v865_v28, 0.0  ;;  %v868_v29 = vadd.f32 %v1360_v37, %v1979_v58  ;;  %v859_v18 = vpop.f32.mrb[11].mxu1  ;;  %1022 = vadd.xlane.f32.xlu1 %v982_v38  ;;  %1028 = vadd.xlane.f32.xlu0 %v985_v48 }
 0x265   :  { %v860_v46 = vadd.f32 %v1979_v58, %v859_v18  ;;  %v947_v50 = vmax.f32 %v857_v57, 0.0 }
 0x266   :  { %v950_v6 = vmax.f32 %v868_v29, 0.0  ;;  %v988_v26 = vmul.f32 %v1986_v62, %v949_v49 }
 0x267   :  { %v948_v16 = vmax.f32 %v860_v46, 0.0  ;;  %v986_v42 = vmul.f32 %v1986_v62, %v947_v50 }
 0x268   :  { %1034 = vadd.xlane.f32.xlu1 %v988_v26  ;;  %1024 = vadd.xlane.f32.xlu0 %v983_v30  ;;  %v989_v51 = vmul.f32 %v1986_v62, %v950_v6 }
 0x269   :  { %v1363_v27 = vpop.f32.mrb[12].mxu1  ;;  %v987_v47 = vmul.f32 %v1986_v62, %v948_v16 }
 0x26a   :  { %v881_v17 = vadd.f32 %v1363_v27, %v1979_v58  ;;  %v872_v54 = vpop.f32.mrb[13].mxu1 }
 0x26b   :  { %v873_v55 = vadd.f32 %v1979_v58, %v872_v54  ;;  %v1364_v43 = vpop.f32.mrb[14].mxu1 }
 0x26c   :  { %v953_v32 = vmax.f32 %v881_v17, 0.0  ;;  %v884_v63 = vadd.f32 %v1364_v43, %v1979_v58  ;;  %v875_v52 = vpop.f32.mrb[15].mxu1  ;;  %1030 = vadd.xlane.f32.xlu1 %v986_v42  ;;  %1036 = vadd.xlane.f32.xlu0 %v989_v51 }
 0x26d   :  { %v951_v34 = vmax.f32 %v873_v55, 0.0  ;;  %v876_v31 = vadd.f32 %v1979_v58, %v875_v52 }
 0x26e   :  { %v954_v2 = vmax.f32 %v884_v63, 0.0  ;;  %v992_v22 = vmul.f32 %v1986_v62, %v953_v32 }
 0x26f   :  { %v952_v19 = vmax.f32 %v876_v31, 0.0  ;;  %v990_v60 = vmul.f32 %v1986_v62, %v951_v34 }
 0x270   :  { %1042 = vadd.xlane.f32.xlu1 %v992_v22  ;;  %1032 = vadd.xlane.f32.xlu0 %v987_v47  ;;  %v993_v12 = vmul.f32 %v1986_v62, %v954_v2 }
 0x271   :  { %v1367_v35 = vpop.f32.mrb[16].mxu1  ;;  %v991_v9 = vmul.f32 %v1986_v62, %v952_v19 }
 0x272   :  { %v897_v59 = vadd.f32 %v1367_v35, %v1979_v58  ;;  %v888_v56 = vpop.f32.mrb[17].mxu1 }
 0x273   :  { %v889_v20 = vadd.f32 %v1979_v58, %v888_v56  ;;  %v1368_v3 = vpop.f32.mrb[18].mxu1 }
 0x274   :  { %v957_v11 = vmax.f32 %v897_v59, 0.0  ;;  %v900_v7 = vadd.f32 %v1368_v3, %v1979_v58  ;;  %v891_v0 = vpop.f32.mrb[19].mxu1  ;;  %1038 = vadd.xlane.f32.xlu1 %v990_v60  ;;  %1044 = vadd.xlane.f32.xlu0 %v993_v12 }
 0x275   :  { %v892_v39 = vadd.f32 %v1979_v58, %v891_v0  ;;  %v955_v4 = vmax.f32 %v889_v20, 0.0 }
 0x276   :  { %v958_v8 = vmax.f32 %v900_v7, 0.0  ;;  %v996_v61 = vmul.f32 %v1986_v62, %v957_v11 }
 0x277   :  { %v956_v36 = vmax.f32 %v892_v39, 0.0  ;;  %v994_v24 = vmul.f32 %v1986_v62, %v955_v4 }
 0x278   :  { %1050 = vadd.xlane.f32.xlu1 %v996_v61  ;;  %1040 = vadd.xlane.f32.xlu0 %v991_v9  ;;  %v997_v13 = vmul.f32 %v1986_v62, %v958_v8 }
 0x279   :  { %v1371_v40 = vpop.f32.mrb[20].mxu1  ;;  %v995_v10 = vmul.f32 %v1986_v62, %v956_v36 }
 0x27a   :  { %v913_v1 = vadd.f32 %v1371_v40, %v1979_v58  ;;  %v904_v5 = vpop.f32.mrb[21].mxu1 }
 0x27b   :  { %v905_v21 = vadd.f32 %v1979_v58, %v904_v5  ;;  %v1372_v53 = vpop.f32.mrb[22].mxu1 }
 0x27c   :  { %v961_v25 = vmax.f32 %v913_v1, 0.0  ;;  %v916_v14 = vadd.f32 %v1372_v53, %v1979_v58  ;;  %v907_v44 = vpop.f32.mrb[23].mxu1  ;;  %1046 = vadd.xlane.f32.xlu1 %v994_v24  ;;  %1052 = vadd.xlane.f32.xlu0 %v997_v13 }
 0x27d   :  { %v959_v23 = vmax.f32 %v905_v21, 0.0  ;;  %v908_v45 = vadd.f32 %v1979_v58, %v907_v44 }
 0x27e   :  { %v962_v41 = vmax.f32 %v916_v14, 0.0  ;;  %v1000_v33 = vmul.f32 %v1986_v62, %v961_v25 }
 0x27f   :  { %v960_v15 = vmax.f32 %v908_v45, 0.0  ;;  %v998_v48 = vmul.f32 %v1986_v62, %v959_v23 }
 0x280   :  { %1058 = vadd.xlane.f32.xlu1 %v1000_v33  ;;  %1048 = vadd.xlane.f32.xlu0 %v995_v10  ;;  %v1001_v57 = vmul.f32 %v1986_v62, %v962_v41 }
 0x281   :  { %v1375_v28 = vpop.f32.mrb[24].mxu1  ;;  %v999_v30 = vmul.f32 %v1986_v62, %v960_v15 }
 0x282   :  { %v920_v38 = vpop.f32.mrb[25].mxu1  ;;  %v929_v37 = vadd.f32 %v1375_v28, %v1979_v58 }
 0x283   :  { %v921_v49 = vadd.f32 %v1979_v58, %v920_v38  ;;  %v1376_v29 = vpop.f32.mrb[26].mxu1 }
 0x284   :  { %v932_v18 = vadd.f32 %v1376_v29, %v1979_v58  ;;  %v923_v46 = vpop.f32.mrb[27].mxu1  ;;  %1054 = vadd.xlane.f32.xlu1 %v998_v48  ;;  %1060 = vadd.xlane.f32.xlu0 %v1001_v57  ;;  %v965_v16 = vmax.f32 %v929_v37, 0.0 }
 0x285   :  { %v963_v50 = vmax.f32 %v921_v49, 0.0  ;;  %v924_v6 = vadd.f32 %v1979_v58, %v923_v46  ;;  %v2053_v58 = vstv %s2217_s2 }
 0x286   :  { %v966_v26 = vmax.f32 %v932_v18, 0.0  ;;  %v1004_v51 = vmul.f32 %v1986_v62, %v965_v16 }
 0x287   :  { %v964_v27 = vmax.f32 %v924_v6, 0.0  ;;  %v1002_v17 = vmul.f32 %v1986_v62, %v963_v50 }
 0x288   :  { %1056 = vadd.xlane.f32.xlu0 %v999_v30  ;;  %v1005_v54 = vmul.f32 %v1986_v62, %v966_v26 }
 0x289   :  { %1062 = vadd.xlane.f32.xlu1 %v1002_v17  ;;  %v1003_v42 = vmul.f32 %v1986_v62, %v964_v27 }
 0x28c   :  { %1064 = vadd.xlane.f32.xlu0 %v1003_v42 }
 0x28d   :  { %1066 = vadd.xlane.f32.xlu1 %v1004_v51 }
 0x290   :  { %1068 = vadd.xlane.f32.xlu0 %v1005_v54 }
 0x2dd   :  { %v1011_v55 = vpop.xlane.xlu0 %1010 }
 0x2de   :  { %v1074_v43 = vadd.f32 %v2053_v58, %v1011_v55 }
 0x2e0   :  { %1107 = vst.msk [vmem:[%s2224_s9 + $0x10] sm:$0xff] %vm1104_vm1, %v1074_v43  ;;  %v1009_v32 = vpop.xlane.xlu1 %1008 }
 0x2e1   :  { %v1073_v62 = vadd.f32 %v2053_v58, %v1009_v32  ;;  %v1007_v63 = vpop.xlane.xlu0 %1006 }
 0x2e2   :  { %v1072_v52 = vadd.f32 %v2053_v58, %v1007_v63 }
 0x2e3   :  { %1106 = vst.msk [vmem:[%s2224_s9 + $0x8] sm:$0xff] %vm1104_vm1, %v1073_v62 }
 0x2e4   :  { %1105 = vst.msk [vmem:[%s2224_s9] sm:$0xff] %vm1104_vm1, %v1072_v52 }
 0x2e5   :  { %v1019_v47 = vpop.xlane.xlu1 %1018  ;;  %v1013_v34 = vpop.xlane.xlu0 %1012 }
 0x2e6   :  { %v1078_v2 = vadd.f32 %v2053_v58, %v1019_v47  ;;  %v1075_v31 = vadd.f32 %v2053_v58, %v1013_v34 }
 0x2e8   :  { %1111 = vst.msk [vmem:[%s2224_s9 + $0x30] sm:$0xff] %vm1104_vm1, %v1078_v2  ;;  %1108 = vst.msk [vmem:[%s2224_s9 + $0x18] sm:$0xff] %vm1104_vm1, %v1075_v31 }
 0x2e9   :  { %v1015_v22 = vpop.xlane.xlu1 %1014  ;;  %v1021_v35 = vpop.xlane.xlu0 %1020 }
 0x2ea   :  { %v1076_v19 = vadd.f32 %v2053_v58, %v1015_v22  ;;  %v1079_v59 = vadd.f32 %v2053_v58, %v1021_v35 }
 0x2ec   :  { %1109 = vst.msk [vmem:[%s2224_s9 + $0x20] sm:$0xff] %vm1104_vm1, %v1076_v19  ;;  %1112 = vst.msk [vmem:[%s2224_s9 + $0x38] sm:$0xff] %vm1104_vm1, %v1079_v59 }
 0x2ed   :  { %v1027_v56 = vpop.xlane.xlu1 %1026  ;;  %v1017_v60 = vpop.xlane.xlu0 %1016 }
 0x2ee   :  { %v1082_v12 = vadd.f32 %v2053_v58, %v1027_v56  ;;  %v1077_v20 = vadd.f32 %v2053_v58, %v1017_v60 }
 0x2f0   :  { %1115 = vst.msk [vmem:[%s2224_s9 + $0x50] sm:$0xff] %vm1104_vm1, %v1082_v12  ;;  %1110 = vst.msk [vmem:[%s2224_s9 + $0x28] sm:$0xff] %vm1104_vm1, %v1077_v20 }
 0x2f1   :  { %v1023_v3 = vpop.xlane.xlu1 %1022  ;;  %v1029_v11 = vpop.xlane.xlu0 %1028 }
 0x2f2   :  { %v1080_v7 = vadd.f32 %v2053_v58, %v1023_v3  ;;  %v1083_v0 = vadd.f32 %v2053_v58, %v1029_v11 }
 0x2f4   :  { %1113 = vst.msk [vmem:[%s2224_s9 + $0x40] sm:$0xff] %vm1104_vm1, %v1080_v7  ;;  %1116 = vst.msk [vmem:[%s2224_s9 + $0x58] sm:$0xff] %vm1104_vm1, %v1083_v0 }
 0x2f5   :  { %v1035_v39 = vpop.xlane.xlu1 %1034  ;;  %v1025_v4 = vpop.xlane.xlu0 %1024 }
 0x2f6   :  { %v1086_v8 = vadd.f32 %v2053_v58, %v1035_v39  ;;  %v1081_v61 = vadd.f32 %v2053_v58, %v1025_v4 }
 0x2f8   :  { %1119 = vst.msk [vmem:[%s2224_s9 + $0x70] sm:$0xff] %vm1104_vm1, %v1086_v8  ;;  %1114 = vst.msk [vmem:[%s2224_s9 + $0x48] sm:$0xff] %vm1104_vm1, %v1081_v61 }
 0x2f9   :  { %v1031_v9 = vpop.xlane.xlu1 %1030  ;;  %v1037_v36 = vpop.xlane.xlu0 %1036 }
 0x2fa   :  { %v1084_v40 = vadd.f32 %v2053_v58, %v1031_v9  ;;  %v1087_v1 = vadd.f32 %v2053_v58, %v1037_v36 }
 0x2fc   :  { %1117 = vst.msk [vmem:[%s2224_s9 + $0x60] sm:$0xff] %vm1104_vm1, %v1084_v40  ;;  %1120 = vst.msk [vmem:[%s2224_s9 + $0x78] sm:$0xff] %vm1104_vm1, %v1087_v1 }
 0x2fd   :  { %v1043_v5 = vpop.xlane.xlu1 %1042  ;;  %v1033_v24 = vpop.xlane.xlu0 %1032 }
 0x2fe   :  { %v1090_v13 = vadd.f32 %v2053_v58, %v1043_v5  ;;  %v1085_v21 = vadd.f32 %v2053_v58, %v1033_v24 }
 0x300   :  { %1123 = vst.msk [vmem:[%s2224_s9 + $0x90] sm:$0xff] %vm1104_vm1, %v1090_v13  ;;  %1118 = vst.msk [vmem:[%s2224_s9 + $0x68] sm:$0xff] %vm1104_vm1, %v1085_v21 }
 0x301   :  { %v1039_v53 = vpop.xlane.xlu1 %1038  ;;  %v1045_v25 = vpop.xlane.xlu0 %1044 }
 0x302   :  { %v1088_v14 = vadd.f32 %v2053_v58, %v1039_v53  ;;  %v1091_v44 = vadd.f32 %v2053_v58, %v1045_v25 }
 0x304   :  { %1121 = vst.msk [vmem:[%s2224_s9 + $0x80] sm:$0xff] %vm1104_vm1, %v1088_v14  ;;  %1124 = vst.msk [vmem:[%s2224_s9 + $0x98] sm:$0xff] %vm1104_vm1, %v1091_v44 }
 0x305   :  { %v1051_v10 = vpop.xlane.xlu1 %1050  ;;  %v1041_v23 = vpop.xlane.xlu0 %1040 }
 0x306   :  { %v1094_v41 = vadd.f32 %v2053_v58, %v1051_v10  ;;  %v1089_v45 = vadd.f32 %v2053_v58, %v1041_v23 }
 0x308   :  { %1127 = vst.msk [vmem:[%s2224_s9 + $0xb0] sm:$0xff] %vm1104_vm1, %v1094_v41  ;;  %1122 = vst.msk [vmem:[%s2224_s9 + $0x88] sm:$0xff] %vm1104_vm1, %v1089_v45 }
 0x309   :  { %v1047_v33 = vpop.xlane.xlu1 %1046  ;;  %v1053_v28 = vpop.xlane.xlu0 %1052 }
 0x30a   :  { %v1092_v15 = vadd.f32 %v2053_v58, %v1047_v33  ;;  %v1095_v38 = vadd.f32 %v2053_v58, %v1053_v28 }
 0x30c   :  { %1125 = vst.msk [vmem:[%s2224_s9 + $0xa0] sm:$0xff] %vm1104_vm1, %v1092_v15  ;;  %1128 = vst.msk [vmem:[%s2224_s9 + $0xb8] sm:$0xff] %vm1104_vm1, %v1095_v38 }
 0x30d   :  { %v1059_v48 = vpop.xlane.xlu1 %1058  ;;  %v1049_v57 = vpop.xlane.xlu0 %1048 }
 0x30e   :  { %v1098_v37 = vadd.f32 %v2053_v58, %v1059_v48  ;;  %v1093_v49 = vadd.f32 %v2053_v58, %v1049_v57 }
 0x310   :  { %1131 = vst.msk [vmem:[%s2224_s9 + $0xd0] sm:$0xff] %vm1104_vm1, %v1098_v37  ;;  %1126 = vst.msk [vmem:[%s2224_s9 + $0xa8] sm:$0xff] %vm1104_vm1, %v1093_v49 }
 0x311   :  { %v1055_v29 = vpop.xlane.xlu1 %1054  ;;  %v1061_v18 = vpop.xlane.xlu0 %1060 }
 0x312   :  { %v1096_v46 = vadd.f32 %v2053_v58, %v1055_v29  ;;  %v1099_v50 = vadd.f32 %v2053_v58, %v1061_v18 }
 0x314   :  { %1129 = vst.msk [vmem:[%s2224_s9 + $0xc0] sm:$0xff] %vm1104_vm1, %v1096_v46  ;;  %1132 = vst.msk [vmem:[%s2224_s9 + $0xd8] sm:$0xff] %vm1104_vm1, %v1099_v50 }
 0x315   :  { %v1057_v6 = vpop.xlane.xlu0 %1056 }
 0x316   :  { %v1097_v26 = vadd.f32 %v2053_v58, %v1057_v6  ;;  %v1063_v30 = vpop.xlane.xlu1 %1062 }
 0x317   :  { %v1100_v16 = vadd.f32 %v2053_v58, %v1063_v30 }
 0x318   :  { %1130 = vst.msk [vmem:[%s2224_s9 + $0xc8] sm:$0xff] %vm1104_vm1, %v1097_v26 }
 0x319   :  { %1133 = vst.msk [vmem:[%s2224_s9 + $0xe0] sm:$0xff] %vm1104_vm1, %v1100_v16  ;;  %v1065_v27 = vpop.xlane.xlu0 %1064 }
 0x31a   :  { %v1101_v17 = vadd.f32 %v2053_v58, %v1065_v27  ;;  %v1067_v54 = vpop.xlane.xlu1 %1066 }
 0x31b   :  { %v1102_v42 = vadd.f32 %v2053_v58, %v1067_v54 }
 0x31c   :  { %1134 = vst.msk [vmem:[%s2224_s9 + $0xe8] sm:$0xff] %vm1104_vm1, %v1101_v17 }
 0x31d   :  { %1135 = vst.msk [vmem:[%s2224_s9 + $0xf0] sm:$0xff] %vm1104_vm1, %v1102_v42  ;;  %v1069_v51 = vpop.xlane.xlu0 %1068 }
 0x31e   :  { %v1103_v55 = vadd.f32 %v2053_v58, %v1069_v51 }
 0x320   :  { %1136 = vst.msk [vmem:[%s2224_s9 + $0xf8] sm:$0xff] %vm1104_vm1, %v1103_v55 }
 0x321   :  { %1141 = vsyncpa [#allocation5], 1 }

</bundles_post_ra>
